<compile_context>
chip_gen: v5e
topology: v5e:2x2
jax: 0.10.0
libtpu: 0.0.40
codegen_flags: <defaults>
</compile_context>

<pallas_src>
import math

import jax
import jax.numpy as jnp
from jax.experimental import pallas as pl
from jax.experimental.pallas import tpu as pltpu


# ---------------------------------------------------------------------------
# helpers
# ---------------------------------------------------------------------------
def _round_up(x, m):
    return ((x + m - 1) // m) * m


def _pad2d(x, rows, cols):
    r, c = x.shape
    return jnp.pad(x, ((0, rows - r), (0, cols - c)))


# ---------------------------------------------------------------------------
# Kernel 1 (layer 1, fused with layer-2 weight):
#   acc   = sum_k adj[i, k-block] @ xw1[k-block, :]          (bf16 MXU, f32 acc)
#   out_i = prelu(acc, alpha1) @ W2                          (epilogue at k==last)
# ---------------------------------------------------------------------------
def _gcn_prelu_matmul_kernel(adj_ref, xw_ref, alpha_ref, w2_ref, out_ref, acc_ref):
    k = pl.program_id(1)

    @pl.when(k == 0)
    def _():
        acc_ref[...] = jnp.zeros_like(acc_ref)

    acc_ref[...] += jnp.dot(
        adj_ref[...], xw_ref[...], preferred_element_type=jnp.float32
    )

    @pl.when(k == pl.num_programs(1) - 1)
    def _():
        h = acc_ref[...]                       # f32
        a = alpha_ref[...]                     # (1, O1) broadcasts over rows
        h = jnp.where(h > 0, h, a * h)         # PReLU in f32
        out_ref[...] = jnp.dot(
            h.astype(jnp.bfloat16), w2_ref[...], preferred_element_type=jnp.float32
        ).astype(out_ref.dtype)


# ---------------------------------------------------------------------------
# Kernel 2 (layer 2):
#   acc   = sum_k adj[i, k-block] @ y1[k-block, :]
#   out_i = prelu(acc, alpha2)
# ---------------------------------------------------------------------------
def _gcn_prelu_kernel(adj_ref, xw_ref, alpha_ref, out_ref, acc_ref):
    k = pl.program_id(1)

    @pl.when(k == 0)
    def _():
        acc_ref[...] = jnp.zeros_like(acc_ref)

    acc_ref[...] += jnp.dot(
        adj_ref[...], xw_ref[...], preferred_element_type=jnp.float32
    )

    @pl.when(k == pl.num_programs(1) - 1)
    def _():
        h = acc_ref[...]
        a = alpha_ref[...]
        out_ref[...] = jnp.where(h > 0, h, a * h).astype(out_ref.dtype)


# ---------------------------------------------------------------------------
# Wrappers
# ---------------------------------------------------------------------------
_VMEM_LIMIT = 64 * 1024 * 1024  # fits v7x physical VMEM; well under v5e/v6e 128 MiB


def gcn_prelu_matmul(adj_p, xw_p, alpha_p, w2_p, *, tm=128, tk=128):
    """y = prelu((adj_p @ xw_p), alpha_p) @ w2_p   (all padded / lane-dense)."""
    n_p, _ = adj_p.shape
    o1 = xw_p.shape[1]
    o2 = w2_p.shape[1]
    assert n_p % tm == 0 and n_p % tk == 0 and o1 % 128 == 0 and o2 % 128 == 0

    flops = 2 * n_p * n_p * o1 + 2 * n_p * o1 * o2
    bytes_accessed = (adj_p.size + xw_p.size * (n_p // tm) + w2_p.size) * 2 \
        + alpha_p.size * 4 + n_p * o2 * 4

    return pl.pallas_call(
        _gcn_prelu_matmul_kernel,
        out_shape=jax.ShapeDtypeStruct((n_p, o2), jnp.float32),
        grid_spec=pltpu.PrefetchScalarGridSpec(
            num_scalar_prefetch=0,
            grid=(n_p // tm, n_p // tk),
            in_specs=[
                pl.BlockSpec((tm, tk), lambda i, k: (i, k)),   # adj tile (bf16)
                pl.BlockSpec((tk, o1), lambda i, k: (k, 0)),   # xw1 K-slab (bf16)
                pl.BlockSpec((1, o1), lambda i, k: (0, 0)),    # prelu1 alpha (f32)
                pl.BlockSpec((o1, o2), lambda i, k: (0, 0)),   # W2 (bf16, resident)
            ],
            out_specs=pl.BlockSpec((tm, o2), lambda i, k: (i, 0)),
            scratch_shapes=[pltpu.VMEM((tm, o1), jnp.float32)],
        ),
        compiler_params=pltpu.CompilerParams(
            dimension_semantics=("parallel", "arbitrary"),
            vmem_limit_bytes=_VMEM_LIMIT,
        ),
        cost_estimate=pl.CostEstimate(
            flops=flops, transcendentals=0, bytes_accessed=bytes_accessed
        ),
    )(adj_p, xw_p, alpha_p, w2_p)


def gcn_prelu(adj_p, y_p, alpha_p, *, tm=128, tk=128):
    """out = prelu(adj_p @ y_p, alpha_p)   (all padded / lane-dense)."""
    n_p, _ = adj_p.shape
    o = y_p.shape[1]
    assert n_p % tm == 0 and n_p % tk == 0 and o % 128 == 0

    flops = 2 * n_p * n_p * o
    bytes_accessed = (adj_p.size + y_p.size * (n_p // tm)) * 2 \
        + alpha_p.size * 4 + n_p * o * 4

    return pl.pallas_call(
        _gcn_prelu_kernel,
        out_shape=jax.ShapeDtypeStruct((n_p, o), jnp.float32),
        grid_spec=pltpu.PrefetchScalarGridSpec(
            num_scalar_prefetch=0,
            grid=(n_p // tm, n_p // tk),
            in_specs=[
                pl.BlockSpec((tm, tk), lambda i, k: (i, k)),   # adj tile (bf16)
                pl.BlockSpec((tk, o), lambda i, k: (k, 0)),    # y1 K-slab (bf16)
                pl.BlockSpec((1, o), lambda i, k: (0, 0)),     # prelu2 alpha (f32)
            ],
            out_specs=pl.BlockSpec((tm, o), lambda i, k: (i, 0)),
            scratch_shapes=[pltpu.VMEM((tm, o), jnp.float32)],
        ),
        compiler_params=pltpu.CompilerParams(
            dimension_semantics=("parallel", "arbitrary"),
            vmem_limit_bytes=_VMEM_LIMIT,
        ),
        cost_estimate=pl.CostEstimate(
            flops=flops, transcendentals=0, bytes_accessed=bytes_accessed
        ),
    )(adj_p, y_p, alpha_p)


# ---------------------------------------------------------------------------
# Encoder: parameter init (deterministic) + forward
# ---------------------------------------------------------------------------
def xavier_uniform(key, shape, gain):
    fan_in, fan_out = shape
    bound = gain * math.sqrt(6.0 / (fan_in + fan_out))
    return jax.random.uniform(key, shape, jnp.float32, -bound, bound)


def init_encoder_params(key, input_dim, hidden_dim, n_class):
    k1, k2, k3, _ = jax.random.split(key, 4)
    return {
        "gcn1_w": xavier_uniform(k1, (input_dim, hidden_dim), gain=1.414),
        "prelu1_a": jnp.full((hidden_dim,), 0.25, jnp.float32),
        "gcn2_w": xavier_uniform(k2, (hidden_dim, n_class), gain=1.414),
        "prelu2_a": jnp.full((n_class,), 0.25, jnp.float32),
        # last_linear is defined in __init__ but unused in forward; init anyway.
        "last_linear_w": xavier_uniform(k3, (hidden_dim + n_class, n_class), gain=1.0),
        "last_linear_b": jnp.zeros((n_class,), jnp.float32),
    }


def encoder_forward(params, x, adj, corrupt=True, key=None, *, tm=128, tk=128):
    n = x.shape[0]
    hidden = params["gcn1_w"].shape[1]
    n_class = params["gcn2_w"].shape[1]

    if corrupt:
        # torch.randperm equivalent; deterministic via explicit PRNG key (glue).
        perm = jax.random.permutation(key, n)
        x = x[perm]

    # Re-associated matmul: hoist the tiny (N,F)@(F,H) GEMM out of the row loop.
    xw1 = jnp.dot(x.astype(jnp.float32), params["gcn1_w"])

    # Pad N to the tile grid and pad feature dims to lane width (128).
    n_p = _round_up(n, math.lcm(tm, tk))
    o1 = _round_up(hidden, 128)
    o2 = _round_up(n_class, 128)

    adj_p = _pad2d(adj.astype(jnp.float32), n_p, n_p).astype(jnp.bfloat16)
    xw1_p = _pad2d(xw1, n_p, o1).astype(jnp.bfloat16)
    a1_p = _pad2d(params["prelu1_a"].reshape(1, -1).astype(jnp.float32), 1, o1)
    w2_p = _pad2d(params["gcn2_w"].astype(jnp.float32), o1, o2).astype(jnp.bfloat16)
    a2_p = _pad2d(params["prelu2_a"].reshape(1, -1).astype(jnp.float32), 1, o2)

    # Layer 1 fused with layer-2 weight: y1 = prelu1(adj @ xw1) @ W2
    y1 = gcn_prelu_matmul(adj_p, xw1_p, a1_p, w2_p, tm=tm, tk=tk)
    # Layer 2: x2 = prelu2(adj @ y1)
    x2 = gcn_prelu(adj_p, y1.astype(jnp.bfloat16), a2_p, tm=tm, tk=tk)

    return x2[:n, :n_class]


# ---------------------------------------------------------------------------
# References for sanity checks
# ---------------------------------------------------------------------------
def encoder_ref_f32(params, x, adj):
    def prelu(h, a):
        return jnp.where(h > 0, h, a[None, :] * h)
    x1 = prelu(adj @ x @ params["gcn1_w"], params["prelu1_a"])
    x2 = prelu(adj @ x1 @ params["gcn2_w"], params["prelu2_a"])
    return x2


def encoder_ref_bf16(params, x, adj):
    """Mimics the kernel's bf16-operand / f32-accumulate arithmetic."""
    bf = lambda t: t.astype(jnp.bfloat16)

    def prelu(h, a):
        return jnp.where(h > 0, h, a[None, :] * h)

    xw1 = jnp.dot(x.astype(jnp.float32), params["gcn1_w"])
    h1 = jnp.dot(bf(adj), bf(xw1), preferred_element_type=jnp.float32)
    x1 = prelu(h1, params["prelu1_a"])
    y1 = jnp.dot(bf(x1), bf(params["gcn2_w"]), preferred_element_type=jnp.float32)
    h2 = jnp.dot(bf(adj), bf(y1), preferred_element_type=jnp.float32)
    return prelu(h2, params["prelu2_a"])


if __name__ == "__main__":
    # Small but non-trivial: N=256 with tm=tk=128 exercises a (2, 2) grid
    # (row tiling + K accumulation + init/finalize epilogues).
    N, INPUT_DIM, HIDDEN_DIM, N_CLASS = 256, 16, 32, 8

    root = jax.random.PRNGKey(0)
    k_param, k_x, k_adj, k_perm = jax.random.split(root, 4)

    params = init_encoder_params(k_param, INPUT_DIM, HIDDEN_DIM, N_CLASS)

    x = jax.random.normal(k_x, (N, INPUT_DIM), jnp.float32)
    a = jax.random.uniform(k_adj, (N, N), jnp.float32)
    adj = (a + a.T) * 0.5  # symmetric "adjacency"-like dense matrix

    # corrupt=False path: exact structural match with the references.
    out = jax.block_until_ready(encoder_forward(params, x, adj, corrupt=False))
    assert out.shape == (N, N_CLASS)

    ref_bf16 = encoder_ref_bf16(params, x, adj)
    ref_f32 = encoder_ref_f32(params, x, adj)
    assert jnp.all(jnp.isfinite(out))
    assert jnp.allclose(out, ref_bf16, atol=2e-2, rtol=2e-2), "mismatch vs bf16 reference"
    assert jnp.allclose(out, ref_f32, atol=1e-1, rtol=1e-1), "mismatch vs f32 reference"

    # corrupt=True path (deterministic permutation via fixed key) also runs.
    out_c = jax.block_until_ready(
        encoder_forward(params, x, adj, corrupt=True, key=k_perm)
    )
    assert out_c.shape == (N, N_CLASS)
    assert jnp.all(jnp.isfinite(out_c))

    print("KERNEL_OK")
</pallas_src>

<mosaic_0001>
module attributes {stable_mosaic.version = 11 : i64} {
  func.func @_gcn_prelu_matmul_kernel(%arg0: i32, %arg1: i32, %arg2: memref<128x128xbf16, #tpu.memory_space<vmem>>, %arg3: memref<128x128xbf16, #tpu.memory_space<vmem>>, %arg4: memref<1x128xf32, #tpu.memory_space<vmem>>, %arg5: memref<128x128xbf16, #tpu.memory_space<vmem>>, %arg6: memref<128x128xf32, #tpu.memory_space<vmem>>, %arg7: memref<128x128xf32, #tpu.memory_space<vmem>>) attributes {dimension_semantics = [#tpu.dimension_semantics<parallel>, #tpu.dimension_semantics<arbitrary>], iteration_bounds = array<i64: 2, 2>, scalar_prefetch = 0 : i64, scratch_operands = 1 : i64, tpu.core_type = #tpu.core_type<tc>, window_params = [{transform_indices = @transform_0, window_bounds = array<i64: 128, 128>}, {transform_indices = @transform_1, window_bounds = array<i64: 128, 128>}, {pipeline_mode = #tpu.pipeline_mode<synchronous>, transform_indices = @transform_2, window_bounds = array<i64: 1, 128>}, {pipeline_mode = #tpu.pipeline_mode<synchronous>, transform_indices = @transform_3, window_bounds = array<i64: 128, 128>}, {transform_indices = @transform_4, window_bounds = array<i64: 128, 128>}]} {
    %c0_i32 = arith.constant 0 : i32
    %0 = arith.cmpi eq, %arg1, %c0_i32 : i32
    %1 = arith.extui %0 : i1 to i32
    %c0_i32_0 = arith.constant 0 : i32
    %2 = arith.cmpi ne, %1, %c0_i32_0 : i32
    scf.if %2 {
      %cst_9 = arith.constant 0.000000e+00 : f32
      %12 = vector.broadcast %cst_9 : f32 to vector<128x128xf32>
      %c0_10 = arith.constant 0 : index
      %c0_11 = arith.constant 0 : index
      %13 = vector.load %arg7[%c0_10, %c0_11] : memref<128x128xf32, #tpu.memory_space<vmem>>, vector<128x128xf32>
      tpu.vector_store %arg7[%c0_10, %c0_11], %12 {strides = array<i32>} : memref<128x128xf32, #tpu.memory_space<vmem>>, vector<128x128xf32>,
    } else {
    }
    %c0 = arith.constant 0 : index
    %c0_1 = arith.constant 0 : index
    %3 = vector.load %arg7[%c0, %c0_1] : memref<128x128xf32, #tpu.memory_space<vmem>>, vector<128x128xf32>
    %c0_2 = arith.constant 0 : index
    %c0_3 = arith.constant 0 : index
    %4 = vector.load %arg2[%c0_2, %c0_3] : memref<128x128xbf16, #tpu.memory_space<vmem>>, vector<128x128xbf16>
    %c0_4 = arith.constant 0 : index
    %c0_5 = arith.constant 0 : index
    %5 = vector.load %arg3[%c0_4, %c0_5] : memref<128x128xbf16, #tpu.memory_space<vmem>>, vector<128x128xbf16>
    %cst = arith.constant dense<0.000000e+00> : vector<128x128xf32>
    %6 = tpu.matmul %4, %5, %cst {dimension_numbers = #tpu.dot_dimension_numbers<[1], [0], [0], [1], [0, 0, 1, 1], [], []>} : vector<128x128xbf16>, vector<128x128xbf16>, vector<128x128xf32> -> vector<128x128xf32>
    %7 = arith.addf %3, %6 : vector<128x128xf32>
    %c0_6 = arith.constant 0 : index
    %c0_7 = arith.constant 0 : index
    %8 = vector.load %arg7[%c0_6, %c0_7] : memref<128x128xf32, #tpu.memory_space<vmem>>, vector<128x128xf32>
    tpu.vector_store %arg7[%c0_6, %c0_7], %7 {strides = array<i32>} : memref<128x128xf32, #tpu.memory_space<vmem>>, vector<128x128xf32>,
    %c1_i32 = arith.constant 1 : i32
    %9 = arith.cmpi eq, %arg1, %c1_i32 : i32
    %10 = arith.extui %9 : i1 to i32
    %c0_i32_8 = arith.constant 0 : i32
    %11 = arith.cmpi ne, %10, %c0_i32_8 : i32
    scf.if %11 {
      %c0_9 = arith.constant 0 : index
      %c0_10 = arith.constant 0 : index
      %12 = vector.load %arg7[%c0_9, %c0_10] : memref<128x128xf32, #tpu.memory_space<vmem>>, vector<128x128xf32>
      %c0_11 = arith.constant 0 : index
      %c0_12 = arith.constant 0 : index
      %13 = vector.load %arg4[%c0_11, %c0_12] : memref<1x128xf32, #tpu.memory_space<vmem>>, vector<1x128xf32>
      %cst_13 = arith.constant 0.000000e+00 : f32
      %14 = vector.broadcast %cst_13 : f32 to vector<128x128xf32>
      %15 = arith.cmpf ogt, %12, %14 : vector<128x128xf32>
      %16 = vector.broadcast %13 : vector<1x128xf32> to vector<128x128xf32>
      %17 = arith.mulf %16, %12 : vector<128x128xf32>
      %18 = arith.select %15, %12, %17 : vector<128x128xi1>, vector<128x128xf32>
      %19 = arith.truncf %18 : vector<128x128xf32> to vector<128x128xbf16>
      %c0_14 = arith.constant 0 : index
      %c0_15 = arith.constant 0 : index
      %20 = vector.load %arg5[%c0_14, %c0_15] : memref<128x128xbf16, #tpu.memory_space<vmem>>, vector<128x128xbf16>
      %cst_16 = arith.constant dense<0.000000e+00> : vector<128x128xf32>
      %21 = tpu.matmul %19, %20, %cst_16 {dimension_numbers = #tpu.dot_dimension_numbers<[1], [0], [0], [1], [0, 0, 1, 1], [], []>} : vector<128x128xbf16>, vector<128x128xbf16>, vector<128x128xf32> -> vector<128x128xf32>
      %c0_17 = arith.constant 0 : index
      %c0_18 = arith.constant 0 : index
      %22 = vector.load %arg6[%c0_17, %c0_18] : memref<128x128xf32, #tpu.memory_space<vmem>>, vector<128x128xf32>
      tpu.vector_store %arg6[%c0_17, %c0_18], %21 {strides = array<i32>} : memref<128x128xf32, #tpu.memory_space<vmem>>, vector<128x128xf32>,
    } else {
    }
    return
  }
  func.func @transform_0(%arg0: i32, %arg1: i32) -> (i32, i32) {
    %c0_i32 = arith.constant 0 : i32
    return %arg0, %arg1 : i32, i32
  }
  func.func @transform_1(%arg0: i32, %arg1: i32) -> (i32, i32) {
    %c0_i32 = arith.constant 0 : i32
    %c0_i32_0 = arith.constant 0 : i32
    return %arg1, %c0_i32 : i32, i32
  }
  func.func @transform_2(%arg0: i32, %arg1: i32) -> (i32, i32) {
    %c0_i32 = arith.constant 0 : i32
    %c0_i32_0 = arith.constant 0 : i32
    %c0_i32_1 = arith.constant 0 : i32
    return %c0_i32, %c0_i32_0 : i32, i32
  }
  func.func @transform_3(%arg0: i32, %arg1: i32) -> (i32, i32) {
    %c0_i32 = arith.constant 0 : i32
    %c0_i32_0 = arith.constant 0 : i32
    %c0_i32_1 = arith.constant 0 : i32
    return %c0_i32, %c0_i32_0 : i32, i32
  }
  func.func @transform_4(%arg0: i32, %arg1: i32) -> (i32, i32) {
    %c0_i32 = arith.constant 0 : i32
    %c0_i32_0 = arith.constant 0 : i32
    return %arg0, %c0_i32 : i32, i32
  }
}

</mosaic_0001>

<bundles_post_ra>
// kernel: tpu_custom_call.1
= control target key start
LH: loop header
LB: loop body
LE: loop exit
PB: predicated region body
PF: predicated region fallthrough
CT: control target
= control target key end

     0   :  { %s1841_s0 = inlined_call_operand.hbm [shape: bf16[256,256], index: 0, kind: input, shape index: {}]   ;;  %s1842_s1 = inlined_call_operand.hbm [shape: bf16[256,128], index: 1, kind: input, shape index: {}]   ;;  %s1843_s2 = inlined_call_operand.vmem [shape: f32[1,128], index: 2, kind: input, shape index: {}]   ;;  %s1844_s3 = inlined_call_operand.hbm [shape: bf16[128,128], index: 3, kind: input, shape index: {}]   ;;  %s1845_s4 = inlined_call_operand.hbm [shape: f32[256,128], index: 4, kind: output, shape index: {}]  }
   0x1   :  { %1860 = sst [smem:[#allocation25_spill]] %s1841_s0 }
   0x2   :  { %1861 = sst [smem:[#allocation26_spill]] %s1843_s2 }
   0x3   :  { %1862 = sst [smem:[#allocation27_spill]] %s1844_s3 }
   0x4   :  { %1863 = sst [smem:[#allocation28_spill]] %s1845_s4 }
   0x5   :  { %9 = vsyncpa [#allocation4], 0 }
   0x6   :  { %11 = vsyncpa [#allocation4 + $0x1], 0 }
   0x7   :  { %12 = vsyncpa [#allocation7], 0 }
   0x8   :  { %14 = vsyncpa [#allocation7 + $0x1], 0 }
   0x9   :  { %15 = vsyncpa [#allocation5], 0 }
   0xa   :  { %17 = vsyncpa [#allocation5 + $0x1], 0  ;;  %s1505_s15 = smov 0   ;;  %s1507_s16 = smov 0  }
   0xb   :  { %s1509_s17 = smov 0   ;;  %s1511_s18 = smov 0  }
   0xc   :  { %s1513_s19 = smov 0   ;;  %s1515_s20 = smov 0  }
   0xd   :  { %s1517_s21 = smov 0   ;;  %s1519_s22 = smov 0  }
   0xe   :  { %s1521_s23 = smov 0   ;;  %s1523_s24 = smov 0  }
   0xf   :  { %s1525_s25 = smov 0   ;;  %s1527_s26 = smov 0  }
  0x10   :  { %s1529_s27 = smov 0   ;;  %s1531_s28 = smov 0  }
  0x11 LB: > { %1864 = sst [smem:[#allocation14_spill]] %s1419_s15  ;;  %s1572_s29 = sadd.s32 4294967295, %s1471_s28   ;;  %s1471_s28 = sphi %s1531_s28, %s23_s28   ;;  %s1467_s27 = sphi %s1529_s27, %s1909_s27   ;;  %s1463_s26 = sphi %s1527_s26, %s1908_s26   ;;  %s1459_s25 = sphi %s1525_s25, %s1907_s25   ;;  %s1455_s24 = sphi %s1523_s24, %s1906_s24   ;;  %s1451_s23 = sphi %s1521_s23, %s1895_s23   ;;  %s1447_s22 = sphi %s1519_s22, %s1905_s22   ;;  %s1443_s21 = sphi %s1517_s21, %s1904_s21   ;;  %s1439_s20 = sphi %s1515_s20, %s1903_s20   ;;  %s1435_s19 = sphi %s1513_s19, %s1902_s19   ;;  %s1431_s18 = sphi %s1511_s18, %s1901_s18   ;;  %s1427_s17 = sphi %s1509_s17, %s1893_s17   ;;  %s1423_s16 = sphi %s1507_s16, %s1900_s16   ;;  %s1419_s15 = sphi %s1505_s15, %s1899_s15  }
  0x12   : > { %1865 = sst [smem:[#allocation15_spill]] %s1427_s17  ;;  %s884_s30 = sadd.s32 4294967294, %s1471_s28  }
  0x13   : > { %1866 = sst [smem:[#allocation16_spill]] %s1451_s23  ;;  %p57_p0 = scmp.ne.s32.totalorder %s1447_s22, %s1443_s21 }
  0x14   : > { %1867 = sst [smem:[#allocation17_spill]] %s1459_s25  ;;  %p58_p1 = scmp.eq.s32.totalorder %s1572_s29, 0 }
  0x15   : > { %1868 = sst [smem:[#allocation18_spill]] %s1467_s27  ;;  %p83_p2 = scmp.ne.s32.totalorder %s1435_s19, %s1431_s18 }
  0x16   : > { %p148_p3 = scmp.ne.s32.totalorder %s1427_s17, %s1423_s16  ;;  %p1582_p4 = por %p58_p1, %p57_p0 }
  0x17   : > { %p149_p5 = scmp.eq.s32.totalorder %s1572_s29, 3  ;;  %p1589_p6 = por %p83_p2, %p58_p1 }
  0x18   : > { %p154_p7 = scmp.ne.s32.totalorder %s1423_s16, %s1419_s15  ;;  %p155_p9 = scmp.eq.s32.totalorder %s884_s30, 3 }
  0x19   : > { %p1595_p8 = por %p149_p5, %p148_p3  ;;  %p885_p10 = scmp.ge.s32.totalorder %s1471_s28, 1 }
  0x1a   : > { %p162_p11 = scmp.lt.s32.totalorder %s1471_s28, 5  ;;  %p1601_p12 = por %p155_p9, %p154_p7 }
  0x1b   : > { %s1871_s7 = scalar_select %p1595_p8, 1, 0 }
  0x1c   : > { %s1873_s8 = scalar_select %p1601_p12, 1, 0 }
  0x1d   : > { %1872 = sst [smem:[#allocation19_spill]] %s1871_s7  ;;  %p1605_p13 = pnand %p885_p10, %p162_p11 }
  0x1e   : > { %1874 = sst [smem:[#allocation20_spill]] %s1873_s8  ;;  %s1473_s13 = smov [#allocation8]  }
  0x1f   : > { %s1876_s3 = sld [smem:[#allocation27_spill]]  ;;  %p1088_p0 = pneg %p1605_p13 }
  0x20   : > { %s178_s14 = sshll.u32 %s1473_s13, 4  ;;  %s1846_s18 = smov 64   ;;  %s179_s14 = int_to_ptr.vmem [resolvable:$true] %s178_s14 }
  0x21   : > { %p1089_p2 = pnand %p1088_p0, %p58_p1  ;;  %s1848_s21 = smov 4  }
  0x22   : > { %s32_s30 = sadd.s32 1, %s1463_s26  ;;  %s35_s10 = sadd.s32 1, %s1467_s27 }
  0x23   : > { %p33_p3 = scmp.ge.s32.totalorder %s32_s30, 2  ;;  %s44_s11 = sadd.s32 1, %s1451_s23 }
  0x24   : > { %p51_p5 = scmp.ne.s32.totalorder %s1451_s23, %s1447_s22  ;;  %p52_p7 = scmp.eq.s32.totalorder %s1471_s28, 0 }
  0x25   : > { %s176_s12 = sshll.u32 %s1876_s3, 4  ;;  %s1911_s30 = smov (%p33_p3, %s32_s30), 0  ;;  %s177_s12 = int_to_ptr.hbm [resolvable:$true] %s176_s12 }
  0x26   : > { %1091 = dma.hbm_to_vmem [thread:$0]  (!%p1089_p2), %s177_s12, 1024, %s179_s14, [#allocation7], %s1846_s18, %s1846_s18, %s1848_s21  }
  0x27   : > { %1877 = sst [smem:[#allocation21_spill]] %s1911_s30  ;;  %s1913_s10 = smov (!%p33_p3, %s35_s10), %s1467_s27 }
  0x28   : > { %s1630_s13 = ssub.s32 %s1463_s26, %s1911_s30  ;;  %p1634_p9 = por %p52_p7, %p51_p5 }
  0x29   : > { %p37_p10 = scmp.ge.s32.totalorder %s1913_s10, 2  ;;  %p68_p11 = scmp.eq.s32.totalorder %s1630_s13, 0 }
  0x2a   : > { %s138_s14 = sadd.s32 1, %s1427_s17  ;;  %p1104_p0 = scmp.lt.s32.totalorder %s1471_s28, 4 }
  0x2b   : > { %s1915_s10 = smov (%p37_p10, %s1913_s10), 0  ;;  %s192_s18 = sand.u32 1, %s1451_s23  }
  0x2c   : > { %1879 = sst [smem:[#allocation22_spill]] %s1915_s10  ;;  %s1003_s21 = sshll.u32 %s1467_s27, 5 }
  0x2d   : > { %s39_s3 = ssub.s32 %s1467_s27, %s1915_s10  ;;  %s888_s8 = sshll.u32 %s192_s18, 6 }
  0x2e   : > { %s41_s30 = sor.u32 %s1630_s13, %s39_s3  ;;  %p136_p2 = scmp.eq.s32.totalorder %s39_s3, 0 }
  0x2f   : > { %p42_p3 = scmp.eq.s32.totalorder %s41_s30, 0  ;;  %s201_s7 = sadd.s32 %s1463_s26, %s1003_s21 }
  0x30   : > { %s1649_s15 = scalar_select %p136_p2, %s1427_s17, %s138_s14  }
  0x31   : > { %s1652_s4 = scalar_select %p42_p3, %s1451_s23, %s44_s11  }
  0x32   : > { %1880 = sst [smem:[#allocation23_spill]] %s1649_s15  ;;  %s891_s25 = sshll.u32 %s201_s7, 2 }
  0x33   : > { %1881 = sst [smem:[#allocation24_spill]] %s1652_s4  ;;  %s196_s2 = scalar_lea.vmem [#allocation3], %s888_s8 }
  0x34   : > { %s206_s10 = sshll.u32 %s196_s2, 4  ;;  %s1882_s0 = sld [smem:[#allocation25_spill]]  ;;  %s207_s10 = int_to_ptr.vmem [resolvable:$true] %s206_s10 }
  0x35   : > { %p1093_p5 = pnand %p1104_p0, %p1634_p9  ;;  %s193_s11 = scalar_lea.sflag [#allocation4], %s192_s18 }
  0x36   : > { %s1476_s4 = smov 128   ;;  %s1883_s23 = smov 4  }
  0x37   : > { %s1884_s21 = smov 64   ;;  %s216_s7 = sand.u32 1, %s1471_s28  }
  0x38   : > { %s70_s8 = sadd.s32 1, %s1439_s20  ;;  %p77_p10 = scmp.ne.s32.totalorder %s1439_s20, %s1435_s19 }
  0x39   : > { %s1671_s2 = scalar_select %p68_p11, %s1439_s20, %s70_s8  }
  0x3a   : > { %s203_s27 = scalar_lea.hbm %s1882_s0, %s891_s25  ;;  %p79_p2 = por %p77_p10, %p52_p7 }
  0x3b   : > { %s204_s14 = sshll.u32 %s203_s27, 4  ;;  %s218_s25 = sand.u32 1, %s1439_s20   ;;  %s205_s14 = int_to_ptr.hbm [resolvable:$true] %s204_s14 }
  0x3c   : > { %1095 = dma.hbm_to_vmem [thread:$0]  (!%p1093_p5), %s205_s14, 1024, %s207_s10, %s193_s11, %s1476_s4, %s1884_s21, %s1883_s23  }
  0x3d   : > { %s1004_s27 = sshll.u32 %s1463_s26, 6  ;;  %s892_s12 = sshll.u32 %s218_s25, 6 }
  0x3e   : > { %s225_s18 = scalar_lea.hbm %s1842_s1, %s1004_s27  ;;  %s220_s15 = scalar_lea.vmem [#allocation6], %s892_s12 }
  0x3f   : > { %s226_s0 = sshll.u32 %s225_s18, 4  ;;  %s228_s17 = sshll.u32 %s220_s15, 4  ;;  %s227_s0 = int_to_ptr.hbm [resolvable:$true] %s226_s0  ;;  %s229_s17 = int_to_ptr.vmem [resolvable:$true] %s228_s17 }
  0x40   : > { %p1096_p9 = pnand %p1104_p0, %p79_p2  ;;  %s217_s4 = scalar_lea.sflag [#allocation7], %s216_s7 }
  0x41   : > { %240 = sbr.rel (%p1605_p13) target bundleno = 507 (0x1fb), region = 36  ;;  %s242_s10 = sand.u32 (!%p1605_p13), 1, %s1447_s22  }
  0x42   : > { %1098 = dma.hbm_to_vmem [thread:$0]  (!%p1096_p9), %s227_s0, 1024, %s229_s17, %s217_s4, %s1884_s21, %s1884_s21, %s1883_s23  }
  0x43   : > { %s896_s13 = sshll.u32 (!%p1605_p13), %s242_s10, 6  ;;  %s243_s14 = scalar_lea.sflag (!%p1605_p13), [#allocation4], %s242_s10 }
  0x44   : > { %s1688_s11 = scalar_lea.vmem (!%p1605_p13), [#allocation3], %s896_s13 }
  0x46   : > { %1402 = dma.done.wait (%p1582_p4), %s243_s14, 1024  }
  0x47   : > { %1404 = vsyncadd (%p1582_p4), %s243_s14, 4294966272  ;;  %s252_s15 = sand.u32 1, %s1572_s29   ;;  %s254_s0 = sand.u32 1, %s1435_s19  }
  0x48   : > { %s897_s17 = sshll.u32 %s254_s0, 6  ;;  %s253_s23 = scalar_lea.sflag [#allocation7], %s252_s15 }
  0x49   : > { %s1696_s9 = scalar_lea.vmem [#allocation6], %s897_s17 }
  0x4a   : > { %1406 = dma.done.wait (%p1589_p6), %s253_s23, 1024  }
  0x4b   : > { %1408 = vsyncadd (%p1589_p6), %s253_s23, 4294966272 }
  0x4c   : > { %1410 = dma.done.wait (%p58_p1), [#allocation7], 1024  }
  0x4d   : > { %1412 = vsyncadd (%p58_p1), [#allocation7], 4294966272  ;;  %s289_s5 = sand.u32 1, %s1423_s16   ;;  %p900_p4 = scmp.ne.s32.totalorder %s1455_s24, 0 }
  0x4e   : > { %s899_s21 = sshll.u32 %s289_s5, 7 }
  0x4f   : > { %s1709_s7 = scalar_lea.vmem [#allocation9], %s899_s21  ;;  %298 = sbr.rel (%p900_p4) target bundleno = 101 (0x65), region = 52 }
  0x54   : > { %v1477_v0 = vmov 0.0  }
  0x55   : > { %299 = vst [vmem:[#allocation2 + $0x30] sm:$0xff] %v1477_v0 }
  0x56   : > { %300 = vst [vmem:[#allocation2] sm:$0xff] %v1477_v0 }
  0x57   : > { %301 = vst [vmem:[#allocation2 + $0x58] sm:$0xff] %v1477_v0 }
  0x58   : > { %302 = vst [vmem:[#allocation2 + $0x18] sm:$0xff] %v1477_v0 }
  0x59   : > { %303 = vst [vmem:[#allocation2 + $0x50] sm:$0xff] %v1477_v0 }
  0x5a   : > { %304 = vst [vmem:[#allocation2 + $0x68] sm:$0xff] %v1477_v0 }
  0x5b   : > { %305 = vst [vmem:[#allocation2 + $0x8] sm:$0xff] %v1477_v0 }
  0x5c   : > { %306 = vst [vmem:[#allocation2 + $0x48] sm:$0xff] %v1477_v0 }
  0x5d   : > { %307 = vst [vmem:[#allocation2 + $0x40] sm:$0xff] %v1477_v0 }
  0x5e   : > { %308 = vst [vmem:[#allocation2 + $0x20] sm:$0xff] %v1477_v0 }
  0x5f   : > { %309 = vst [vmem:[#allocation2 + $0x10] sm:$0xff] %v1477_v0 }
  0x60   : > { %310 = vst [vmem:[#allocation2 + $0x38] sm:$0xff] %v1477_v0 }
  0x61   : > { %311 = vst [vmem:[#allocation2 + $0x60] sm:$0xff] %v1477_v0 }
  0x62   : > { %312 = vst [vmem:[#allocation2 + $0x70] sm:$0xff] %v1477_v0 }
  0x63   : > { %313 = vst [vmem:[#allocation2 + $0x78] sm:$0xff] %v1477_v0 }
  0x64   : > { %314 = vst [vmem:[#allocation2 + $0x28] sm:$0xff] %v1477_v0 }
  0x65 PF: > { %v1020_v1 = vld [vmem:[%s1696_s9 + $0x38] sm:$0xff]  ;;  %v1019_v2 = vld [vmem:[%s1696_s9 + $0x30] sm:$0xff]  ;;  %v1018_v3 = vld [vmem:[%s1696_s9 + $0x28] sm:$0xff]  ;;  %p965_p1 = scmp.ne.s32.totalorder %s1455_s24, 1 }
  0x66   : > { %459 = vmatpush.bf16.msra.mxu0 %v1020_v1  ;;  %1030 = vmatpush.bf16.msra.mxu1 %v1020_v1  ;;  %v1017_v4 = vld [vmem:[%s1696_s9 + $0x20] sm:$0xff]  ;;  %v1016_v5 = vld [vmem:[%s1696_s9 + $0x18] sm:$0xff]  ;;  %v1015_v6 = vld [vmem:[%s1696_s9 + $0x10] sm:$0xff]  ;;  %s1885_s6 = sld [smem:[#allocation26_spill]] (!%p965_p1) }
  0x67   : > { %1031 = vmatpush.bf16.msra.mxu2 %v1020_v1  ;;  %1032 = vmatpush.bf16.msra.mxu3 %v1020_v1  ;;  %v1014_v7 = vld [vmem:[%s1696_s9 + $0x8] sm:$0xff]  ;;  %v1013_v8 = vld [vmem:[%s1696_s9] sm:$0xff]  ;;  %v1007_v10 = vld [vmem:[%s1688_s11 + $0x10] sm:$0xff] }
  0x68   : > { %v1005_v9 = vld [vmem:[%s1688_s11] sm:$0xff]  ;;  %v1011_v12 = vld [vmem:[%s1688_s11 + $0x30] sm:$0xff]  ;;  %v1006_v13 = vld [vmem:[%s1688_s11 + $0x8] sm:$0xff] }
  0x69   : > { %v1009_v11 = vld [vmem:[%s1688_s11 + $0x20] sm:$0xff]  ;;  %v1008_v14 = vld [vmem:[%s1688_s11 + $0x18] sm:$0xff]  ;;  %v1010_v15 = vld [vmem:[%s1688_s11 + $0x28] sm:$0xff] }
  0x6a   : > { %460 = vmatpush.bf16.msra.mxu0 %v1019_v2  ;;  %1033 = vmatpush.bf16.msra.mxu1 %v1019_v2  ;;  %v1012_v16 = vld [vmem:[%s1688_s11 + $0x38] sm:$0xff]  ;;  %v315_v17 = vld [vmem:[#allocation2 + $0x30] sm:$0xff]  ;;  %v323_v23 = vld [vmem:[#allocation2 + $0x40] sm:$0xff] }
  0x6b   : > { %1034 = vmatpush.bf16.msra.mxu2 %v1019_v2  ;;  %1035 = vmatpush.bf16.msra.mxu3 %v1019_v2  ;;  %v319_v18 = vld [vmem:[#allocation2 + $0x50] sm:$0xff]  ;;  %v327_v24 = vld [vmem:[#allocation2 + $0x60] sm:$0xff]  ;;  %v320_v26 = vld [vmem:[#allocation2 + $0x68] sm:$0xff] }
  0x6c   : > { %v316_v25 = vld [vmem:[#allocation2] sm:$0xff]  ;;  %v328_v36 = vld [vmem:[#allocation2 + $0x70] sm:$0xff]  ;;  %v317_v37 = vld [vmem:[#allocation2 + $0x58] sm:$0xff] }
  0x6d   : > { %v324_v35 = vld [vmem:[#allocation2 + $0x20] sm:$0xff]  ;;  %v321_v38 = vld [vmem:[#allocation2 + $0x8] sm:$0xff]  ;;  %v325_v47 = vld [vmem:[#allocation2 + $0x10] sm:$0xff] }
  0x6e   : > { %461 = vmatpush.bf16.msra.mxu0 %v1018_v3  ;;  %1036 = vmatpush.bf16.msra.mxu1 %v1018_v3  ;;  %v329_v48 = vld [vmem:[#allocation2 + $0x78] sm:$0xff]  ;;  %v322_v50 = vld [vmem:[#allocation2 + $0x48] sm:$0xff] }
  0x6f   : > { %1037 = vmatpush.bf16.msra.mxu2 %v1018_v3  ;;  %1038 = vmatpush.bf16.msra.mxu3 %v1018_v3  ;;  %v318_v49 = vld [vmem:[#allocation2 + $0x18] sm:$0xff]  ;;  %v330_v60 = vld [vmem:[#allocation2 + $0x28] sm:$0xff] }
  0x70   : > { %v326_v59 = vld [vmem:[#allocation2 + $0x38] sm:$0xff] }
  0x72   : > { %462 = vmatpush.bf16.msra.mxu0 %v1017_v4  ;;  %1039 = vmatpush.bf16.msra.mxu1 %v1017_v4 }
  0x73   : > { %1040 = vmatpush.bf16.msra.mxu2 %v1017_v4  ;;  %1041 = vmatpush.bf16.msra.mxu3 %v1017_v4 }
  0x76   : > { %463 = vmatpush.bf16.msra.mxu0 %v1016_v5  ;;  %1042 = vmatpush.bf16.msra.mxu1 %v1016_v5 }
  0x77   : > { %1043 = vmatpush.bf16.msra.mxu2 %v1016_v5  ;;  %1044 = vmatpush.bf16.msra.mxu3 %v1016_v5 }
  0x7a   : > { %464 = vmatpush.bf16.msra.mxu0 %v1015_v6  ;;  %1045 = vmatpush.bf16.msra.mxu1 %v1015_v6 }
  0x7b   : > { %1046 = vmatpush.bf16.msra.mxu2 %v1015_v6  ;;  %1047 = vmatpush.bf16.msra.mxu3 %v1015_v6 }
  0x7e   : > { %465 = vmatpush.bf16.msra.mxu0 %v1014_v7  ;;  %1048 = vmatpush.bf16.msra.mxu1 %v1014_v7 }
  0x7f   : > { %1049 = vmatpush.bf16.msra.mxu2 %v1014_v7  ;;  %1050 = vmatpush.bf16.msra.mxu3 %v1014_v7 }
  0x82   : > { %466 = vmatpush.bf16.msra.mxu0 %v1013_v8  ;;  %1051 = vmatpush.bf16.msra.mxu1 %v1013_v8 }
  0x83   : > { %1052 = vmatpush.bf16.msra.mxu2 %v1013_v8  ;;  %1053 = vmatpush.bf16.msra.mxu3 %v1013_v8 }
  0x85   : > { %467 = vmatmul.bf16.vlgmr.msra.gmra.mxu0 %v1005_v9  ;;  %477 = vmatmul.bf16.vlgmr.msra.gmra.mxu1 %v1007_v10 }
  0x86   : > { %487 = vmatmul.bf16.vlgmr.msra.gmra.mxu2 %v1009_v11  ;;  %497 = vmatmul.bf16.vlgmr.msra.gmra.mxu3 %v1011_v12 }
  0x95   : > { %472 = vmatmul.bf16.gmra.mxu0 %v1006_v13  ;;  %482 = vmatmul.bf16.gmra.mxu1 %v1008_v14 }
  0x96   : > { %492 = vmatmul.bf16.gmra.mxu2 %v1010_v15  ;;  %502 = vmatmul.bf16.gmra.mxu3 %v1012_v16 }
 0x102   : > { %v468_v19 = vpop.f32.mrf.mxu0  ;;  %v478_v20 = vpop.f32.mrf.mxu1 }
 0x103   : > { %v508_v21 = vadd.f32 %v468_v19, %v315_v17  ;;  %v512_v22 = vadd.f32 %v478_v20, %v319_v18 }
 0x105   : > { %524 = vst [vmem:[#allocation2 + $0x30] sm:$0xff] %v508_v21 }
 0x106   : > { %528 = vst [vmem:[#allocation2 + $0x50] sm:$0xff] %v512_v22 }
 0x109   : > { %v488_v27 = vpop.f32.mrf.mxu2  ;;  %v498_v28 = vpop.f32.mrf.mxu3 }
 0x10a   : > { %v516_v29 = vadd.f32 %v488_v27, %v323_v23  ;;  %v520_v30 = vadd.f32 %v498_v28, %v327_v24  ;;  %v470_v31 = vpop.f32.mrf.mxu0  ;;  %v480_v32 = vpop.f32.mrf.mxu1 }
 0x10b   : > { %v509_v33 = vadd.f32 %v470_v31, %v316_v25  ;;  %v513_v34 = vadd.f32 %v480_v32, %v320_v26 }
 0x10c   : > { %532 = vst [vmem:[#allocation2 + $0x40] sm:$0xff] %v516_v29 }
 0x10d   : > { %536 = vst [vmem:[#allocation2 + $0x60] sm:$0xff] %v520_v30 }
 0x10e   : > { %525 = vst [vmem:[#allocation2] sm:$0xff] %v509_v33 }
 0x10f   : > { %529 = vst [vmem:[#allocation2 + $0x68] sm:$0xff] %v513_v34 }
 0x111   : > { %v490_v39 = vpop.f32.mrf.mxu2  ;;  %v500_v40 = vpop.f32.mrf.mxu3 }
 0x112   : > { %v517_v41 = vadd.f32 %v490_v39, %v324_v35  ;;  %v521_v42 = vadd.f32 %v500_v40, %v328_v36  ;;  %v473_v43 = vpop.f32.mrf.mxu0  ;;  %v483_v44 = vpop.f32.mrf.mxu1 }
 0x113   : > { %v510_v45 = vadd.f32 %v473_v43, %v317_v37  ;;  %v514_v46 = vadd.f32 %v483_v44, %v321_v38 }
 0x114   : > { %533 = vst [vmem:[#allocation2 + $0x20] sm:$0xff] %v517_v41 }
 0x115   : > { %537 = vst [vmem:[#allocation2 + $0x70] sm:$0xff] %v521_v42 }
 0x116   : > { %526 = vst [vmem:[#allocation2 + $0x58] sm:$0xff] %v510_v45 }
 0x117   : > { %530 = vst [vmem:[#allocation2 + $0x8] sm:$0xff] %v514_v46 }
 0x119   : > { %v493_v51 = vpop.f32.mrf.mxu2  ;;  %v503_v52 = vpop.f32.mrf.mxu3 }
 0x11a   : > { %v518_v53 = vadd.f32 %v493_v51, %v325_v47  ;;  %v522_v54 = vadd.f32 %v503_v52, %v329_v48  ;;  %v475_v55 = vpop.f32.mrf.mxu0  ;;  %v485_v56 = vpop.f32.mrf.mxu1 }
 0x11b   : > { %v511_v57 = vadd.f32 %v475_v55, %v318_v49  ;;  %v515_v58 = vadd.f32 %v485_v56, %v322_v50 }
 0x11c   : > { %534 = vst [vmem:[#allocation2 + $0x10] sm:$0xff] %v518_v53 }
 0x11d   : > { %538 = vst [vmem:[#allocation2 + $0x78] sm:$0xff] %v522_v54 }
 0x11e   : > { %527 = vst [vmem:[#allocation2 + $0x18] sm:$0xff] %v511_v57 }
 0x11f   : > { %531 = vst [vmem:[#allocation2 + $0x48] sm:$0xff] %v515_v58 }
 0x121   : > { %v495_v61 = vpop.f32.mrf.mxu2  ;;  %v505_v62 = vpop.f32.mrf.mxu3  ;;  %543 = sbr.rel (%p965_p1) target bundleno = 485 (0x1e5), region = 56 }
 0x122   : > { %v519_v63 = vadd.f32 %v495_v61, %v326_v59  ;;  %v523_v0 = vadd.f32 %v505_v62, %v330_v60 }
 0x124   : > { %535 = vst [vmem:[#allocation2 + $0x38] sm:$0xff] %v519_v63 }
 0x125   : > { %539 = vst [vmem:[#allocation2 + $0x28] sm:$0xff] %v523_v0 }
 0x126   : > { %v1028_v1 = vld [vmem:[#allocation8 + $0x38] sm:$0xff]  ;;  %v1027_v2 = vld [vmem:[#allocation8 + $0x30] sm:$0xff]  ;;  %v1026_v3 = vld [vmem:[#allocation8 + $0x28] sm:$0xff] }
 0x127   : > { %684 = vmatpush.bf16.msra.mxu0 %v1028_v1  ;;  %1054 = vmatpush.bf16.msra.mxu1 %v1028_v1  ;;  %v1025_v4 = vld [vmem:[#allocation8 + $0x20] sm:$0xff]  ;;  %v1024_v5 = vld [vmem:[#allocation8 + $0x18] sm:$0xff]  ;;  %v544_v6 = vld [vmem:[#allocation2 + $0x30] sm:$0xff] }
 0x128   : > { %1055 = vmatpush.bf16.msra.mxu2 %v1028_v1  ;;  %1056 = vmatpush.bf16.msra.mxu3 %v1028_v1  ;;  %v1732_v7 = vld [vmem:[%s1885_s6] ss:$0 sm:$0xff]  ;;  %v1023_v8 = vld [vmem:[#allocation8 + $0x10] sm:$0xff]  ;;  %v549_v11 = vld [vmem:[#allocation2 + $0x68] sm:$0xff]  ;;  %vm561_vm0 = vcmp.gt.f32.partialorder %v544_v6, 0.0 }
 0x129   : > { %v545_v9 = vld [vmem:[#allocation2] sm:$0xff]  ;;  %v548_v10 = vld [vmem:[#allocation2 + $0x50] sm:$0xff]  ;;  %v580_v16 = vmul.f32 %v1732_v7, %v544_v6  ;;  %v1022_v18 = vld [vmem:[#allocation8 + $0x8] sm:$0xff]  ;;  %vm566_vm3 = vcmp.gt.f32.partialorder %v549_v11, 0.0  ;;  %v585_v20 = vmul.f32 %v1732_v7, %v549_v11 }
 0x12a   : > { %v552_v12 = vld [vmem:[#allocation2 + $0x40] sm:$0xff]  ;;  %v557_v15 = vld [vmem:[#allocation2 + $0x70] sm:$0xff]  ;;  %vm562_vm1 = vcmp.gt.f32.partialorder %v545_v9, 0.0  ;;  %v581_v17 = vmul.f32 %v1732_v7, %v545_v9  ;;  %vm565_vm2 = vcmp.gt.f32.partialorder %v548_v10, 0.0  ;;  %v584_v19 = vmul.f32 %v1732_v7, %v548_v10  ;;  %v546_v38 = vld [vmem:[#allocation2 + $0x58] sm:$0xff] }
 0x12b   : > { %685 = vmatpush.bf16.msra.mxu0 %v1027_v2  ;;  %1057 = vmatpush.bf16.msra.mxu1 %v1027_v2  ;;  %v553_v13 = vld [vmem:[#allocation2 + $0x20] sm:$0xff]  ;;  %v588_v21 = vmul.f32 %v1732_v7, %v552_v12  ;;  %vm569_vm4 = vcmp.gt.f32.partialorder %v552_v12, 0.0  ;;  %v593_v24 = vmul.f32 %v1732_v7, %v557_v15  ;;  %vm574_vm7 = vcmp.gt.f32.partialorder %v557_v15, 0.0  ;;  %v547_v39 = vld [vmem:[#allocation2 + $0x18] sm:$0xff]  ;;  %v550_v40 = vld [vmem:[#allocation2 + $0x8] sm:$0xff] }
 0x12c   : > { %1058 = vmatpush.bf16.msra.mxu2 %v1027_v2  ;;  %1059 = vmatpush.bf16.msra.mxu3 %v1027_v2  ;;  %v556_v14 = vld [vmem:[#allocation2 + $0x60] sm:$0xff]  ;;  %v589_v22 = vmul.f32 %v1732_v7, %v553_v13  ;;  %vm570_vm5 = vcmp.gt.f32.partialorder %v553_v13, 0.0  ;;  %v596_v25 = vsel %vm561_vm0, %v544_v6, %v580_v16  ;;  %v597_v26 = vsel %vm562_vm1, %v545_v9, %v581_v17  ;;  %v551_v41 = vld [vmem:[#allocation2 + $0x48] sm:$0xff]  ;;  %v554_v42 = vld [vmem:[#allocation2 + $0x10] sm:$0xff] }
 0x12d   : > { %v592_v23 = vmul.f32 %v1732_v7, %v556_v14  ;;  %vm573_vm6 = vcmp.gt.f32.partialorder %v556_v14, 0.0  ;;  %v1021_v27 = vld [vmem:[#allocation8] sm:$0xff]  ;;  %v600_v28 = vsel %vm565_vm2, %v548_v10, %v584_v19  ;;  %v601_v29 = vsel %vm566_vm3, %v549_v11, %v585_v20  ;;  %v555_v43 = vld [vmem:[#allocation2 + $0x38] sm:$0xff]  ;;  %v559_v45 = vld [vmem:[#allocation2 + $0x28] sm:$0xff] }
 0x12e   : > { %v604_v30 = vsel %vm569_vm4, %v552_v12, %v588_v21  ;;  %v605_v31 = vsel %vm570_vm5, %v553_v13, %v589_v22  ;;  %v609_v33 = vsel %vm574_vm7, %v557_v15, %v593_v24  ;;  %v612_v34 = vpack.c.bf16 %v597_v26, %v596_v25  ;;  %v558_v44 = vld [vmem:[#allocation2 + $0x78] sm:$0xff] }
 0x12f   : > { %686 = vmatpush.bf16.msra.mxu0 %v1026_v3  ;;  %1060 = vmatpush.bf16.msra.mxu1 %v1026_v3  ;;  %v608_v32 = vsel %vm573_vm6, %v556_v14, %v592_v23  ;;  %v614_v35 = vpack.c.bf16 %v601_v29, %v600_v28  ;;  %v616_v36 = vpack.c.bf16 %v605_v31, %v604_v30  ;;  %vm563_vm8 = vcmp.gt.f32.partialorder %v546_v38, 0.0 }
 0x130   : > { %1061 = vmatpush.bf16.msra.mxu2 %v1026_v3  ;;  %1062 = vmatpush.bf16.msra.mxu3 %v1026_v3  ;;  %v618_v37 = vpack.c.bf16 %v609_v33, %v608_v32  ;;  %vm564_vm9 = vcmp.gt.f32.partialorder %v547_v39, 0.0  ;;  %v582_v46 = vmul.f32 %v1732_v7, %v546_v38  ;;  %v583_v47 = vmul.f32 %v1732_v7, %v547_v39 }
 0x131   : > { %vm567_vm10 = vcmp.gt.f32.partialorder %v550_v40, 0.0  ;;  %vm568_vm11 = vcmp.gt.f32.partialorder %v551_v41, 0.0  ;;  %v586_v48 = vmul.f32 %v1732_v7, %v550_v40  ;;  %v587_v49 = vmul.f32 %v1732_v7, %v551_v41 }
 0x132   : > { %v590_v50 = vmul.f32 %v1732_v7, %v554_v42  ;;  %v591_v51 = vmul.f32 %v1732_v7, %v555_v43  ;;  %v594_v52 = vmul.f32 %v1732_v7, %v558_v44  ;;  %v595_v53 = vmul.f32 %v1732_v7, %v559_v45 }
 0x133   : > { %687 = vmatpush.bf16.msra.mxu0 %v1025_v4  ;;  %1063 = vmatpush.bf16.msra.mxu1 %v1025_v4  ;;  %vm571_vm12 = vcmp.gt.f32.partialorder %v554_v42, 0.0  ;;  %vm572_vm13 = vcmp.gt.f32.partialorder %v555_v43, 0.0  ;;  %vm575_vm14 = vcmp.gt.f32.partialorder %v558_v44, 0.0  ;;  %vm576_vm15 = vcmp.gt.f32.partialorder %v559_v45, 0.0 }
 0x134   : > { %1064 = vmatpush.bf16.msra.mxu2 %v1025_v4  ;;  %1065 = vmatpush.bf16.msra.mxu3 %v1025_v4  ;;  %v598_v54 = vsel %vm563_vm8, %v546_v38, %v582_v46  ;;  %v599_v55 = vsel %vm564_vm9, %v547_v39, %v583_v47  ;;  %v602_v56 = vsel %vm567_vm10, %v550_v40, %v586_v48 }
 0x135   : > { %v603_v57 = vsel %vm568_vm11, %v551_v41, %v587_v49  ;;  %v606_v58 = vsel %vm571_vm12, %v554_v42, %v590_v50  ;;  %v607_v59 = vsel %vm572_vm13, %v555_v43, %v591_v51  ;;  %v610_v60 = vsel %vm575_vm14, %v558_v44, %v594_v52 }
 0x136   : > { %v611_v61 = vsel %vm576_vm15, %v559_v45, %v595_v53  ;;  %v613_v62 = vpack.c.bf16 %v599_v55, %v598_v54  ;;  %v615_v63 = vpack.c.bf16 %v603_v57, %v602_v56  ;;  %v617_v0 = vpack.c.bf16 %v607_v59, %v606_v58 }
 0x137   : > { %688 = vmatpush.bf16.msra.mxu0 %v1024_v5  ;;  %1066 = vmatpush.bf16.msra.mxu1 %v1024_v5  ;;  %v619_v1 = vpack.c.bf16 %v611_v61, %v610_v60 }
 0x138   : > { %1067 = vmatpush.bf16.msra.mxu2 %v1024_v5  ;;  %1068 = vmatpush.bf16.msra.mxu3 %v1024_v5 }
 0x13b   : > { %689 = vmatpush.bf16.msra.mxu0 %v1023_v8  ;;  %1069 = vmatpush.bf16.msra.mxu1 %v1023_v8 }
 0x13c   : > { %1070 = vmatpush.bf16.msra.mxu2 %v1023_v8  ;;  %1071 = vmatpush.bf16.msra.mxu3 %v1023_v8 }
 0x13f   : > { %690 = vmatpush.bf16.msra.mxu0 %v1022_v18  ;;  %1072 = vmatpush.bf16.msra.mxu1 %v1022_v18 }
 0x140   : > { %1073 = vmatpush.bf16.msra.mxu2 %v1022_v18  ;;  %1074 = vmatpush.bf16.msra.mxu3 %v1022_v18 }
 0x143   : > { %691 = vmatpush.bf16.msra.mxu0 %v1021_v27  ;;  %1075 = vmatpush.bf16.msra.mxu1 %v1021_v27 }
 0x144   : > { %1076 = vmatpush.bf16.msra.mxu2 %v1021_v27  ;;  %1077 = vmatpush.bf16.msra.mxu3 %v1021_v27 }
 0x146   : > { %692 = vmatmul.bf16.vlgmr.msra.gmra.mxu0 %v612_v34  ;;  %702 = vmatmul.bf16.vlgmr.msra.gmra.mxu1 %v614_v35 }
 0x147   : > { %712 = vmatmul.bf16.vlgmr.msra.gmra.mxu2 %v616_v36  ;;  %722 = vmatmul.bf16.vlgmr.msra.gmra.mxu3 %v618_v37 }
 0x156   : > { %697 = vmatmul.bf16.gmra.mxu0 %v613_v62  ;;  %707 = vmatmul.bf16.gmra.mxu1 %v615_v63 }
 0x157   : > { %717 = vmatmul.bf16.gmra.mxu2 %v617_v0  ;;  %727 = vmatmul.bf16.gmra.mxu3 %v619_v1 }
 0x1c3   : > { %v693_v2 = vpop.f32.mrf.mxu0  ;;  %v703_v3 = vpop.f32.mrf.mxu1 }
 0x1c4   : > { %733 = vst [vmem:[%s1709_s7] sm:$0xff] %v693_v2 }
 0x1c5   : > { %737 = vst [vmem:[%s1709_s7 + $0x20] sm:$0xff] %v703_v3 }
 0x1ca   : > { %v713_v4 = vpop.f32.mrf.mxu2  ;;  %v723_v5 = vpop.f32.mrf.mxu3 }
 0x1cb   : > { %741 = vst [vmem:[%s1709_s7 + $0x40] sm:$0xff] %v713_v4  ;;  %v695_v6 = vpop.f32.mrf.mxu0  ;;  %v705_v7 = vpop.f32.mrf.mxu1 }
 0x1cc   : > { %745 = vst [vmem:[%s1709_s7 + $0x60] sm:$0xff] %v723_v5 }
 0x1cd   : > { %734 = vst [vmem:[%s1709_s7 + $0x8] sm:$0xff] %v695_v6 }
 0x1ce   : > { %738 = vst [vmem:[%s1709_s7 + $0x28] sm:$0xff] %v705_v7 }
 0x1d2   : > { %v715_v8 = vpop.f32.mrf.mxu2  ;;  %v725_v9 = vpop.f32.mrf.mxu3 }
 0x1d3   : > { %742 = vst [vmem:[%s1709_s7 + $0x48] sm:$0xff] %v715_v8  ;;  %v698_v10 = vpop.f32.mrf.mxu0  ;;  %v708_v11 = vpop.f32.mrf.mxu1 }
 0x1d4   : > { %746 = vst [vmem:[%s1709_s7 + $0x68] sm:$0xff] %v725_v9 }
 0x1d5   : > { %735 = vst [vmem:[%s1709_s7 + $0x10] sm:$0xff] %v698_v10 }
 0x1d6   : > { %739 = vst [vmem:[%s1709_s7 + $0x30] sm:$0xff] %v708_v11 }
 0x1da   : > { %v718_v12 = vpop.f32.mrf.mxu2  ;;  %v728_v13 = vpop.f32.mrf.mxu3 }
 0x1db   : > { %743 = vst [vmem:[%s1709_s7 + $0x50] sm:$0xff] %v718_v12  ;;  %v700_v14 = vpop.f32.mrf.mxu0  ;;  %v710_v15 = vpop.f32.mrf.mxu1 }
 0x1dc   : > { %747 = vst [vmem:[%s1709_s7 + $0x70] sm:$0xff] %v728_v13 }
 0x1dd   : > { %736 = vst [vmem:[%s1709_s7 + $0x18] sm:$0xff] %v700_v14 }
 0x1de   : > { %740 = vst [vmem:[%s1709_s7 + $0x38] sm:$0xff] %v710_v15 }
 0x1e2   : > { %v720_v16 = vpop.f32.mrf.mxu2  ;;  %v730_v17 = vpop.f32.mrf.mxu3 }
 0x1e3   : > { %744 = vst [vmem:[%s1709_s7 + $0x58] sm:$0xff] %v720_v16 }
 0x1e4   : > { %748 = vst [vmem:[%s1709_s7 + $0x78] sm:$0xff] %v730_v17 }
 0x1e5 PF: > { %s1886_s8 = sld [smem:[#allocation17_spill]]  ;;  %s762_s4 = sshll.u32 %s1709_s7, 4  ;;  %s763_s4 = int_to_ptr.vmem [resolvable:$true] %s762_s4 }
 0x1e6   : > { %s1888_s30 = sld [smem:[#allocation28_spill]]  ;;  %s750_s13 = scalar_lea.sflag [#allocation5], %s289_s5 }
 0x1eb   : > { %s1029_s27 = sshll.u32 %s1886_s8, 7 }
 0x1ec   : > { %s761_s18 = scalar_lea.hbm %s1888_s30, %s1029_s27  ;;  %s1337_s17 = scalar_lea.hbm %s1888_s30, 256 }
 0x1ed   : > { %s764_s10 = sshll.u32 %s761_s18, 4  ;;  %s765_s10 = int_to_ptr.hbm [resolvable:$true] %s764_s10 }
 0x1ee   : > { %s1331_s14 = sshra.s32 %s765_s10, 4  ;;  %s1332_s14 = int_to_ptr.hbm [resolvable:$true] %s1331_s14 }
 0x1ef   : > { %s1333_s11 = scalar_lea.hbm %s1332_s14, 128  ;;  %p1338_p11 = scmp.lt.s32.totalorder %s1332_s14, %s1888_s30 }
 0x1f0   : > { %p1334_p6 = scmp.ne.s32.totalorder %s1332_s14, %s1333_s11  ;;  %p1339_p0 = scmp.lt.s32.totalorder %s1337_s17, %s1333_s11 }
 0x1f2   : > { %p1335_p13 = pnand %p1334_p6, %p1595_p8  ;;  %p1340_p3 = por %p1339_p0, %p1338_p11 }
 0x1f4   : > { %p1336_p7 = pneg %p1335_p13 }
 0x1f6   : > { %p1341_p5 = pnand %p1340_p3, %p1336_p7 }
 0x1f8   : > { %1344 = shalt.err (!%p1341_p5)
}
 0x1f9   : > { %s1478_s5 = smov 128   ;;  %s1479_s21 = smov 8  }
 0x1fa   : > { %1086 = dma.vmem_to_hbm [thread:$0]  (%p1595_p8), %s763_s4, 2048, %s765_s10, %s750_s13, %s1478_s5, %s1478_s5, %s1479_s21  }
 0x1fb PF: > { %s1889_s7 = sld [smem:[#allocation14_spill]]  ;;  %p1106_p10 = scmp.ge.s32.totalorder %s1471_s28, 2 }
 0x1fd   : > { %p1100_p2 = pnand %p1106_p10, %p1601_p12 }
 0x1ff   : > { %p1101_p9 = pneg %p1100_p2 }
 0x201   : > { %s779_s29 = sand.u32 1, %s1889_s7  }
 0x202   : > { %s780_s6 = scalar_lea.sflag [#allocation5], %s779_s29 }
 0x203   : > { %1414 = dma.done.wait (%p1101_p9), %s780_s6, 2048  }
 0x204   : > { %1416 = vsyncadd (%p1101_p9), %s780_s6, 4294965248  ;;  %s23_s28 = sadd.s32 1, %s1471_s28   ;;  %s1892_s25 = sld [smem:[#allocation15_spill]] }
 0x205   : > { %p1794_p4 = scmp.ge.s32.totalorder %s23_s28, 6   ;;  %s1893_s17 = sld [smem:[#allocation23_spill]] }
 0x206   : > { %s1894_s27 = sld [smem:[#allocation16_spill]]  ;;  %s1899_s15 = smov %s1423_s16 }
 0x207   : > { %s1895_s23 = sld [smem:[#allocation24_spill]]  ;;  %s1901_s18 = smov %s1435_s19 }
 0x208   : > { %s1896_s12 = sld [smem:[#allocation18_spill]]  ;;  %s1902_s19 = smov %s1439_s20 }
 0x209   : > { %s1897_s3 = sld [smem:[#allocation21_spill]]  ;;  %s1903_s20 = smov %s1671_s2 }
 0x20a   : > { %s1898_s4 = sld [smem:[#allocation22_spill]]  ;;  %s1900_s16 = smov %s1892_s25 }
 0x20b   : > { %s1904_s21 = smov %s1447_s22  ;;  %s1906_s24 = smov %s1463_s26 }
 0x20c   : > { %s1905_s22 = smov %s1894_s27  ;;  %22 = sbr.rel (!%p1794_p4) target bundleno = 17 (0x11), region = 106 }
 0x20e   : > { %s1907_s25 = smov %s1896_s12 }
 0x20f   : > { %s1908_s26 = smov %s1897_s3 }
 0x210   : > { %s1909_s27 = smov %s1898_s4 }
 0x211   :  { %786 = vsyncpa [#allocation4], 1 }
 0x212   :  { %788 = vsyncpa [#allocation4 + $0x1], 1 }
 0x213   :  { %789 = vsyncpa [#allocation7], 1 }
 0x214   :  { %791 = vsyncpa [#allocation7 + $0x1], 1 }
 0x215   :  { %792 = vsyncpa [#allocation5], 1 }
 0x216   :  { %794 = vsyncpa [#allocation5 + $0x1], 1 }

</bundles_post_ra>
